<compile_context>
chip_gen: v7x
topology: tpu7x:2x2x1
jax: 0.10.0
libtpu: 0.0.40
codegen_flags: <defaults>
</compile_context>

<pallas_src>
import jax
import jax.numpy as jnp
from jax.experimental import pallas as pl
from jax.experimental.pallas import tpu as pltpu


def _cfg_denoiser_kernel(
    # scalar-prefetch refs (SMEM)
    sigma_ref,        # (B,)        per-batch noise level
    cscale_ref,       # (1,)        cond_scale
    # tiled inputs (VMEM) — transposed / channels-first layout
    x_ref,            # (1, C, HW)
    cbias_ref,        # (1, Cmid, 2)  precomputed [uncond, cond] conditioning bias
    w1t_ref,          # (Cmid, C)     W1^T
    w3t_ref,          # (C, Cmid)     W3^T
    bt_ref,           # (C, 1)        bias^T
    # output
    o_ref,            # (1, C, HW)
):
    b_idx = pl.program_id(0)
    sigma = sigma_ref[b_idx]                       # scalar
    cond_scale = cscale_ref[0]                     # scalar

    x = x_ref[0]                                   # (C, HW), HW in lanes
    # Karras-style input preconditioning 1/sqrt(sigma^2 + 1)
    c_in = jax.lax.rsqrt(sigma * sigma + 1.0)
    x_pre = x * c_in                               # (C, HW)

    # Shared first matmul — identical for both CFG branches, computed once.
    h_base = jnp.dot(w1t_ref[...], x_pre,
                     preferred_element_type=jnp.float32)          # (Cmid, HW)

    cb = cbias_ref[0]                              # (Cmid, 2)
    h_u = jnp.tanh(h_base + cb[:, 0:1])            # (Cmid, HW)  uncond branch
    h_c = jnp.tanh(h_base + cb[:, 1:2])            # (Cmid, HW)  cond branch

    hw = h_base.shape[1]
    # Batch both branches' output projections into one MXU push.
    h_stack = jnp.concatenate([h_u, h_c], axis=1)                  # (Cmid, 2*HW)
    out_stack = jnp.dot(w3t_ref[...], h_stack,
                        preferred_element_type=jnp.float32)        # (C, 2*HW)

    bias = bt_ref[...]                             # (C, 1) broadcast over lanes
    out_u = out_stack[:, :hw] + bias
    out_c = out_stack[:, hw:] + bias

    # classifier-free guidance blend
    o_ref[0] = out_u + (out_c - out_u) * cond_scale


def cfg_denoiser(x_nchw, sigma, cond, uncond, cond_scale, params):
    """x_nchw: (B, C, H, W) f32; sigma: (B,); cond/uncond: (B, S, D); cond_scale: scalar."""
    B, C, H, W = x_nchw.shape
    HW = H * W
    w1, w2, w3, bias = params
    Cmid = w1.shape[1]

    # Channels-first flattened layout — pure reshape, no transpose.
    x_bc = x_nchw.reshape(B, C, HW).astype(jnp.float32)

    # Precompute the pooled conditioning bias in XLA (numerically identical):
    #   cbias[b, :, 0] = mean_seq(uncond[b]) @ W2 ; cbias[b, :, 1] = mean_seq(cond[b]) @ W2
    cb_u = jnp.mean(uncond, axis=1) @ w2           # (B, Cmid)
    cb_c = jnp.mean(cond, axis=1) @ w2             # (B, Cmid)
    cbias = jnp.stack([cb_u, cb_c], axis=-1)       # (B, Cmid, 2)

    w1t = w1.T                                     # (Cmid, C)
    w3t = w3.T                                     # (C, Cmid)
    bias_t = bias.T                                # (C, 1)

    sigma = sigma.astype(jnp.float32)
    cscale = jnp.asarray([cond_scale], dtype=jnp.float32)

    grid_spec = pltpu.PrefetchScalarGridSpec(
        num_scalar_prefetch=2,
        grid=(B,),
        in_specs=[
            pl.BlockSpec((1, C, HW), lambda b, sig, cs: (b, 0, 0)),     # x (channels-first)
            pl.BlockSpec((1, Cmid, 2), lambda b, sig, cs: (b, 0, 0)),   # pooled cond bias
            pl.BlockSpec((Cmid, C), lambda b, sig, cs: (0, 0)),         # W1^T
            pl.BlockSpec((C, Cmid), lambda b, sig, cs: (0, 0)),         # W3^T
            pl.BlockSpec((C, 1), lambda b, sig, cs: (0, 0)),            # bias^T
        ],
        out_specs=pl.BlockSpec((1, C, HW), lambda b, sig, cs: (b, 0, 0)),
    )

    out_bc = pl.pallas_call(
        _cfg_denoiser_kernel,
        out_shape=jax.ShapeDtypeStruct((B, C, HW), jnp.float32),
        grid_spec=grid_spec,
        compiler_params=pltpu.CompilerParams(
            dimension_semantics=("parallel",)
        ),
    )(sigma, cscale, x_bc, cbias, w1t, w3t, bias_t)

    # (B, C, HW) -> NCHW is just a reshape.
    return out_bc.reshape(B, C, H, W)


def make_inner_model_params(key, C, D, Cmid):
    k1, k2, k3, k4 = jax.random.split(key, 4)
    w1 = jax.random.normal(k1, (C, Cmid), dtype=jnp.float32) * 0.1
    w2 = jax.random.normal(k2, (D, Cmid), dtype=jnp.float32) * 0.1
    w3 = jax.random.normal(k3, (Cmid, C), dtype=jnp.float32) * 0.1
    b = jax.random.normal(k4, (1, C), dtype=jnp.float32) * 0.01
    return (w1, w2, w3, b)


def cfg_denoiser_ref(x_nchw, sigma, cond, uncond, cond_scale, params):
    """Pure-JAX reference mirroring the PyTorch forward (cat / inner / chunk / blend)."""
    w1, w2, w3, bias = params
    B, C, H, W = x_nchw.shape

    def inner(x_in, sigma_in, cond_in):
        xb = jnp.transpose(x_in, (0, 2, 3, 1)).reshape(x_in.shape[0], H * W, C)
        c_in = 1.0 / jnp.sqrt(sigma_in * sigma_in + 1.0)
        x_pre = xb * c_in[:, None, None]
        c = jnp.mean(cond_in, axis=1)                       # (2B, D)
        h = jnp.einsum("bnc,cm->bnm", x_pre, w1) + (c @ w2)[:, None, :]
        h = jnp.tanh(h)
        out = jnp.einsum("bnm,mc->bnc", h, w3) + bias[None]
        return jnp.transpose(out.reshape(x_in.shape[0], H, W, C), (0, 3, 1, 2))

    x_in = jnp.concatenate([x_nchw] * 2)
    sigma_in = jnp.concatenate([sigma] * 2)
    cond_in = jnp.concatenate([uncond, cond])
    out = inner(x_in, sigma_in, cond_in)
    u, c = out[:B], out[B:]
    return u + (c - u) * cond_scale


if __name__ == "__main__":
    B, C, H, W = 2, 4, 16, 16
    S, D, Cmid = 8, 32, 32
    cond_scale = 7.5

    key = jax.random.PRNGKey(0)
    kx, ks, kc, ku, kp = jax.random.split(key, 5)
    x = jax.random.normal(kx, (B, C, H, W), dtype=jnp.float32)
    sigma = jax.random.uniform(ks, (B,), dtype=jnp.float32, minval=0.1, maxval=10.0)
    cond = jax.random.normal(kc, (B, S, D), dtype=jnp.float32)
    uncond = jax.random.normal(ku, (B, S, D), dtype=jnp.float32)
    params = make_inner_model_params(kp, C, D, Cmid)

    out = cfg_denoiser(x, sigma, cond, uncond, cond_scale, params)
    out = jax.block_until_ready(out)

    ref = cfg_denoiser_ref(x, sigma, cond, uncond, cond_scale, params)
    assert out.shape == (B, C, H, W), out.shape
    assert jnp.allclose(out, ref, atol=1e-4, rtol=1e-4), float(jnp.max(jnp.abs(out - ref)))

    print("KERNEL_OK")
</pallas_src>

<mosaic_0001>
module attributes {stable_mosaic.version = 11 : i64} {
  func.func @_cfg_denoiser_kernel(%arg0: i32, %arg1: memref<2xf32, #tpu.memory_space<smem>>, %arg2: memref<1xf32, #tpu.memory_space<smem>>, %arg3: memref<1x4x256xf32, #tpu.memory_space<vmem>>, %arg4: memref<1x32x2xf32, #tpu.memory_space<vmem>>, %arg5: memref<32x4xf32, #tpu.memory_space<vmem>>, %arg6: memref<4x32xf32, #tpu.memory_space<vmem>>, %arg7: memref<4x1xf32, #tpu.memory_space<vmem>>, %arg8: memref<1x4x256xf32, #tpu.memory_space<vmem>>) attributes {dimension_semantics = [#tpu.dimension_semantics<parallel>], iteration_bounds = array<i64: 2>, scalar_prefetch = 2 : i64, scratch_operands = 0 : i64, tpu.core_type = #tpu.core_type<tc>, window_params = [{transform_indices = @transform_0, window_bounds = array<i64: 1, 4, 256>}, {transform_indices = @transform_1, window_bounds = array<i64: 1, 32, 2>}, {pipeline_mode = #tpu.pipeline_mode<synchronous>, transform_indices = @transform_2, window_bounds = array<i64: 32, 4>}, {pipeline_mode = #tpu.pipeline_mode<synchronous>, transform_indices = @transform_3, window_bounds = array<i64: 4, 32>}, {pipeline_mode = #tpu.pipeline_mode<synchronous>, transform_indices = @transform_4, window_bounds = array<i64: 4, 1>}, {transform_indices = @transform_5, window_bounds = array<i64: 1, 4, 256>}]} {
    %0 = arith.index_cast %arg0 : i32 to index
    %1 = memref.load %arg1[%0] : memref<2xf32, #tpu.memory_space<smem>>
    %c0 = arith.constant 0 : index
    %2 = memref.load %arg2[%c0] : memref<1xf32, #tpu.memory_space<smem>>
    %c0_0 = arith.constant 0 : index
    %c0_1 = arith.constant 0 : index
    %c0_2 = arith.constant 0 : index
    %3 = vector.load %arg3[%c0_0, %c0_1, %c0_2] : memref<1x4x256xf32, #tpu.memory_space<vmem>>, vector<1x4x256xf32>
    %4 = vector.shape_cast %3 : vector<1x4x256xf32> to vector<4x256xf32>
    %5 = arith.mulf %1, %1 : f32
    %cst = arith.constant 1.000000e+00 : f32
    %6 = arith.addf %5, %cst : f32
    %7 = math.rsqrt %6 : f32
    %8 = vector.broadcast %7 : f32 to vector<4x256xf32>
    %9 = arith.mulf %4, %8 : vector<4x256xf32>
    %c0_3 = arith.constant 0 : index
    %c0_4 = arith.constant 0 : index
    %10 = vector.load %arg5[%c0_3, %c0_4] : memref<32x4xf32, #tpu.memory_space<vmem>>, vector<32x4xf32>
    %cst_5 = arith.constant dense<0.000000e+00> : vector<32x256xf32>
    %11 = tpu.matmul %10, %9, %cst_5 {dimension_numbers = #tpu.dot_dimension_numbers<[1], [0], [0], [1], [0, 0, 1, 1], [], []>} : vector<32x4xf32>, vector<4x256xf32>, vector<32x256xf32> -> vector<32x256xf32>
    %c0_6 = arith.constant 0 : index
    %c0_7 = arith.constant 0 : index
    %c0_8 = arith.constant 0 : index
    %12 = vector.load %arg4[%c0_6, %c0_7, %c0_8] : memref<1x32x2xf32, #tpu.memory_space<vmem>>, vector<1x32x2xf32>
    %13 = vector.shape_cast %12 : vector<1x32x2xf32> to vector<32x2xf32>
    %14 = vector.extract_strided_slice %13 {offsets = [0, 0], sizes = [32, 1], strides = [1, 1]} : vector<32x2xf32> to vector<32x1xf32>
    %15 = vector.broadcast %14 : vector<32x1xf32> to vector<32x256xf32>
    %16 = arith.addf %11, %15 : vector<32x256xf32>
    %17 = math.tanh %16 : vector<32x256xf32>
    %18 = vector.extract_strided_slice %13 {offsets = [0, 1], sizes = [32, 1], strides = [1, 1]} : vector<32x2xf32> to vector<32x1xf32>
    %19 = vector.broadcast %18 : vector<32x1xf32> to vector<32x256xf32>
    %20 = arith.addf %11, %19 : vector<32x256xf32>
    %21 = math.tanh %20 : vector<32x256xf32>
    %22 = tpu.concatenate %17, %21 in 1 : vector<32x256xf32>, vector<32x256xf32> -> vector<32x512xf32>
    %c0_9 = arith.constant 0 : index
    %c0_10 = arith.constant 0 : index
    %23 = vector.load %arg6[%c0_9, %c0_10] : memref<4x32xf32, #tpu.memory_space<vmem>>, vector<4x32xf32>
    %cst_11 = arith.constant dense<0.000000e+00> : vector<4x512xf32>
    %24 = tpu.matmul %23, %22, %cst_11 {dimension_numbers = #tpu.dot_dimension_numbers<[1], [0], [0], [1], [0, 0, 1, 1], [], []>} : vector<4x32xf32>, vector<32x512xf32>, vector<4x512xf32> -> vector<4x512xf32>
    %c0_12 = arith.constant 0 : index
    %c0_13 = arith.constant 0 : index
    %25 = vector.load %arg7[%c0_12, %c0_13] : memref<4x1xf32, #tpu.memory_space<vmem>>, vector<4x1xf32>
    %26 = vector.extract_strided_slice %24 {offsets = [0, 0], sizes = [4, 256], strides = [1, 1]} : vector<4x512xf32> to vector<4x256xf32>
    %27 = vector.broadcast %25 : vector<4x1xf32> to vector<4x256xf32>
    %28 = arith.addf %26, %27 : vector<4x256xf32>
    %29 = vector.extract_strided_slice %24 {offsets = [0, 256], sizes = [4, 256], strides = [1, 1]} : vector<4x512xf32> to vector<4x256xf32>
    %30 = vector.broadcast %25 : vector<4x1xf32> to vector<4x256xf32>
    %31 = arith.addf %29, %30 : vector<4x256xf32>
    %32 = arith.subf %31, %28 : vector<4x256xf32>
    %33 = vector.broadcast %2 : f32 to vector<4x256xf32>
    %34 = arith.mulf %32, %33 : vector<4x256xf32>
    %35 = arith.addf %28, %34 : vector<4x256xf32>
    %c0_14 = arith.constant 0 : index
    %c0_15 = arith.constant 0 : index
    %c0_16 = arith.constant 0 : index
    %36 = vector.load %arg8[%c0_14, %c0_15, %c0_16] : memref<1x4x256xf32, #tpu.memory_space<vmem>>, vector<1x4x256xf32>
    %37 = vector.shape_cast %36 : vector<1x4x256xf32> to vector<4x256xf32>
    %38 = vector.shape_cast %35 : vector<4x256xf32> to vector<1x4x256xf32>
    tpu.vector_store %arg8[%c0_14, %c0_15, %c0_16], %38 {strides = array<i32>} : memref<1x4x256xf32, #tpu.memory_space<vmem>>, vector<1x4x256xf32>,
    return
  }
  func.func @transform_0(%arg0: i32, %arg1: memref<2xf32, #tpu.memory_space<smem>>, %arg2: memref<1xf32, #tpu.memory_space<smem>>) -> (i32, i32, i32) {
    %c0_i32 = arith.constant 0 : i32
    %c0_i32_0 = arith.constant 0 : i32
    %c0_i32_1 = arith.constant 0 : i32
    return %arg0, %c0_i32, %c0_i32_0 : i32, i32, i32
  }
  func.func @transform_1(%arg0: i32, %arg1: memref<2xf32, #tpu.memory_space<smem>>, %arg2: memref<1xf32, #tpu.memory_space<smem>>) -> (i32, i32, i32) {
    %c0_i32 = arith.constant 0 : i32
    %c0_i32_0 = arith.constant 0 : i32
    %c0_i32_1 = arith.constant 0 : i32
    return %arg0, %c0_i32, %c0_i32_0 : i32, i32, i32
  }
  func.func @transform_2(%arg0: i32, %arg1: memref<2xf32, #tpu.memory_space<smem>>, %arg2: memref<1xf32, #tpu.memory_space<smem>>) -> (i32, i32) {
    %c0_i32 = arith.constant 0 : i32
    %c0_i32_0 = arith.constant 0 : i32
    %c0_i32_1 = arith.constant 0 : i32
    return %c0_i32, %c0_i32_0 : i32, i32
  }
  func.func @transform_3(%arg0: i32, %arg1: memref<2xf32, #tpu.memory_space<smem>>, %arg2: memref<1xf32, #tpu.memory_space<smem>>) -> (i32, i32) {
    %c0_i32 = arith.constant 0 : i32
    %c0_i32_0 = arith.constant 0 : i32
    %c0_i32_1 = arith.constant 0 : i32
    return %c0_i32, %c0_i32_0 : i32, i32
  }
  func.func @transform_4(%arg0: i32, %arg1: memref<2xf32, #tpu.memory_space<smem>>, %arg2: memref<1xf32, #tpu.memory_space<smem>>) -> (i32, i32) {
    %c0_i32 = arith.constant 0 : i32
    %c0_i32_0 = arith.constant 0 : i32
    %c0_i32_1 = arith.constant 0 : i32
    return %c0_i32, %c0_i32_0 : i32, i32
  }
  func.func @transform_5(%arg0: i32, %arg1: memref<2xf32, #tpu.memory_space<smem>>, %arg2: memref<1xf32, #tpu.memory_space<smem>>) -> (i32, i32, i32) {
    %c0_i32 = arith.constant 0 : i32
    %c0_i32_0 = arith.constant 0 : i32
    %c0_i32_1 = arith.constant 0 : i32
    return %arg0, %c0_i32, %c0_i32_0 : i32, i32, i32
  }
}

</mosaic_0001>

<bundles_post_ra>
// kernel: tpu_custom_call.1
= control target key start
LH: loop header
LB: loop body
LE: loop exit
PB: predicated region body
PF: predicated region fallthrough
CT: control target
= control target key end

     0   :  { %s1089_s0 = inlined_call_operand.vmem [shape: f32[2], index: 0, kind: input, shape index: {}]   ;;  %s1090_s1 = inlined_call_operand.<no memory space> [shape: f32[1], index: 1, kind: input, shape index: {}]   ;;  %s1091_s2 = inlined_call_operand.vmem [shape: f32[2,4,256], index: 2, kind: input, shape index: {}]   ;;  %s1092_s3 = inlined_call_operand.vmem [shape: f32[2,32,2], index: 3, kind: input, shape index: {}]   ;;  %s1093_s4 = inlined_call_operand.vmem [shape: f32[32,4], index: 4, kind: input, shape index: {}]   ;;  %s1094_s5 = inlined_call_operand.vmem [shape: f32[4,32], index: 5, kind: input, shape index: {}]   ;;  %s1095_s6 = inlined_call_operand.vmem [shape: f32[4,1], index: 6, kind: input, shape index: {}]   ;;  %s1096_s7 = inlined_call_operand.hbm [shape: f32[2,4,256], index: 7, kind: output, shape index: {}]  }
   0x1   :  { %s12_s26 = sshll.u32 %s1089_s0, 4  ;;  %16 = sst [smem:[#allocation4]] %s1090_s1  ;;  %s13_s26 = int_to_ptr.vmem [resolvable:$true] %s12_s26 }
   0x2   :  { %s828_s29 = scalar_lea.vmem %s13_s26, 16  ;;  %p833_p1 = scmp.lt.s32.totalorder %s13_s26, %s13_s26 }
   0x3   :  { %p829_p0 = scmp.ne.s32.totalorder %s13_s26, %s828_s29  ;;  %p834_p2 = scmp.lt.s32.totalorder %s828_s29, %s828_s29 }
   0x5   :  { %p835_p3 = por %p834_p2, %p833_p1 }
   0x7   :  { %p836_p4 = pnand %p835_p3, %p829_p0 }
   0x9   :  { %839 = shalt.err (!%p836_p4)  }
   0xa   :  { %s906_s30 = smov [#allocation3]  }
   0xb   :  { %15 = dma.vmem_to_smem %s13_s26, 16, %s906_s30, [#allocation2] }
   0xc   :  { %884 = dma.done.wait [#allocation2], 16 }
   0xd   :  { %885 = vsyncadd [#allocation2], 4294967280 }
   0xe   :  { %18 = sfence }
   0xf   :  { %19 = vsyncpa [#allocation6], 0 }
  0x10   :  { %21 = vsyncpa [#allocation6 + $0x1], 0  ;;  %s957_s0 = smov 0   ;;  %s959_s8 = smov 0  }
  0x11   :  { %s961_s1 = smov 0   ;;  %s963_s9 = smov 0  }
  0x12 LB: > { %s978_s10 = sadd.s32 4294967295, %s904_s9   ;;  %s702_s11 = sadd.s32 4294967294, %s904_s9   ;;  %s904_s9 = sphi %s963_s9, %s1102_s9   ;;  %s900_s1 = sphi %s961_s1, %s1101_s1   ;;  %s896_s8 = sphi %s959_s8, %s1100_s8   ;;  %s892_s0 = sphi %s957_s0, %s1099_s0  }
  0x13   : > { %s982_s12 = sadd.s32 1, %s904_s9   ;;  %s149_s13 = sadd.s32 1, %s900_s1 }
  0x14   : > { %s146_s14 = ssub.s32 %s904_s9, %s982_s12  ;;  %p159_p5 = scmp.ne.s32.totalorder %s900_s1, %s896_s8 }
  0x15   : > { %p147_p6 = scmp.eq.s32.totalorder %s146_s14, 0  ;;  %p160_p7 = scmp.eq.s32.totalorder %s978_s10, 1 }
  0x16   : > { %p165_p8 = scmp.ne.s32.totalorder %s896_s8, %s892_s0  ;;  %p166_p9 = scmp.eq.s32.totalorder %s702_s11, 1 }
  0x17   : > { %s993_s15 = scalar_select %p147_p6, %s900_s1, %s149_s13  }
  0x18   : > { %p995_p10 = por %p160_p7, %p159_p5  ;;  %p999_p11 = por %p166_p9, %p165_p8 }
  0x19   : > { %p705_p12 = scmp.ge.s32.totalorder %s904_s9, 1  ;;  %p209_p13 = scmp.lt.s32.totalorder %s904_s9, 3 }
  0x1b   : > { %p210_p0 = pnand %p705_p12, %p209_p13 }
  0x1c   : > { %s252_s18 = sld [smem:[#allocation3 + %s978_s10]] (!%p210_p0)  ;;  %p242_p1 = scmp.lt.s32.totalorder (!%p210_p0), %s978_s10, 1  ;;  %v907_v0 = vmov (!%p210_p0), 0.0   ;;  %v908_v1 = vmov (!%p210_p0), 0   ;;  %v909_v7 = vmov (!%p210_p0), 1   ;;  %vm281_vm0 = vcmask (!%p210_p0), 1043456  }
  0x1d   : > { %213 = sbr.rel (%p210_p0) target bundleno = 598 (0x256), region = 40  ;;  %350 = vmatprep.mubr.f32.mxu0 (!%p210_p0), %v907_v0  ;;  %516 = vmatprep.mubr.f32.mxu1 (!%p210_p0), %v907_v0  ;;  %v262_v13 = vld [vmem:[%s1093_s4] sm:$0xff] (!%p210_p0)  ;;  %vm268_vm1 = vcmask (!%p210_p0), 31744   ;;  %v263_v14 = vld [vmem:[%s1093_s4 + $0x8] sm:$0xff] (!%p210_p0)  ;;  %v264_v15 = vld [vmem:[%s1093_s4 + $0x10] sm:$0xff] (!%p210_p0)  ;;  %vm448_vm2 = vcmask (!%p210_p0), 261120  }
  0x1e   : > { %788 = vset.pattern.permute.xlu0 (!%p210_p0), %v908_v1  ;;  %789 = vset.pattern.permute.xlu1 (!%p210_p0), %v908_v1  ;;  %v265_v16 = vld [vmem:[%s1093_s4 + $0x18] sm:$0xff] (!%p210_p0)  ;;  %v594_v17 = vld [vmem:[%s1095_s6] sm:$0xf] (!%p210_p0)  ;;  %s253_s27 = sld [smem:[#allocation4]] (!%p210_p0)  ;;  %s239_s28 = sand.u32 (!%p210_p0), 1, %s896_s8  }
  0x22   : > { %s255_s24 = smul.f32 (!%p210_p0), %s252_s18, %s252_s18 }
  0x24   : > { %s1010_s19 = scalar_select %p242_p1, %s978_s10, 1 }
  0x25   : > { %s256_s25 = sadd.f32 1.0, %s255_s24 }
  0x26   : > { %s725_s20 = sshll.u32 %s1010_s19, 5  ;;  %s724_s26 = sshll.u32 %s1010_s19, 3 }
  0x27   : > { %s251_s23 = scalar_lea.vmem %s1092_s3, %s725_s20  ;;  %v257_v6 = vstv %s256_s25  ;;  %s246_s29 = scalar_lea.vmem %s1091_s2, %s724_s26 }
  0x28   : > { %v375_v2 = vld [vmem:[%s251_s23] sm:$0xff]  ;;  %v377_v3 = vld [vmem:[%s251_s23 + $0x10] sm:$0xff]  ;;  %v376_v4 = vld [vmem:[%s251_s23 + $0x8] sm:$0xff]  ;;  %794 = vrsqrt.f32 %v257_v6  ;;  %s617_s20 = scalar_lea.sflag [#allocation6], %s239_s28 }
  0x29   : > { %381 = vperm.xlu0 %788, %v375_v2   ;;  %391 = vperm.xlu1 %789, %v377_v3   ;;  %v378_v5 = vld [vmem:[%s251_s23 + $0x18] sm:$0xff]  ;;  %v254_v9 = vld [vmem:[%s246_s29] sm:$0xff]  ;;  %s706_s29 = sshll.u32 %s239_s28, 3 }
  0x2a   : > { %s241_s11 = scalar_lea.vmem [#allocation5], %s706_s29 }
  0x2b   : > { %s631_s13 = sshll.u32 %s241_s11, 4  ;;  %s1049_s13 = int_to_ptr.vmem [resolvable:$true] %s631_s13 }
  0x2c   : > { %s840_s21 = scalar_lea.vmem %s1049_s13, 128 }
  0x2d   : > { %386 = vperm.xlu0 %788, %v376_v4   ;;  %396 = vperm.xlu1 %789, %v378_v5   ;;  %p841_p2 = scmp.ne.s32.totalorder %s1049_s13, %s840_s21 }
  0x2f   : > { %p842_p3 = pnand %p841_p2, %p995_p10 }
  0x31   : > { %790 = vset.pattern.permute.xlu0 %v909_v7  ;;  %791 = vset.pattern.permute.xlu1 %v909_v7  ;;  %p843_p4 = pneg %p842_p3 }
  0x32   : > { %416 = vperm.xlu0 %790, %v375_v2   ;;  %420 = vperm.xlu1 %791, %v376_v4   ;;  %v795_v8 = vpop.eup %794 }
  0x33   : > { %743 = vpush %v795_v8 }
  0x36   : > { %424 = vperm.xlu1 %791, %v377_v3   ;;  %428 = vperm.xlu0 %790, %v378_v5  }
  0x3a   : > { %792 = vset.pattern.permute.xlu1 %v908_v1  ;;  %793 = vset.pattern.permute.xlu0 %v908_v1 }
  0x3b   : > { %597 = vperm.xlu1 %792, %v594_v17  }
  0x64   : > { %s744_s30 = spop %743 }
  0x65   : > { %v260_v10 = vstv %s744_s30  ;;  %s726_s30 = sshll.u32 %s978_s10, 7  ;;  %s910_s10 = smov [#allocation5]  }
  0x66   : > { %v261_v11 = vmul.f32 %v260_v10, %v254_v9  ;;  %s1047_s19 = scalar_lea.hbm %s1096_s7, %s726_s30  ;;  %s844_s22 = sshll.u32 %s910_s10, 4  ;;  %s845_s22 = int_to_ptr.vmem [resolvable:$false] %s844_s22 }
  0x67   : > { %s846_s23 = scalar_lea.vmem %s845_s22, 256  ;;  %p847_p5 = scmp.lt.s32.totalorder %s1049_s13, %s845_s22 }
  0x68   : > { %v267_v12 = vcombine.high %v261_v11, %v261_v11  ;;  %p848_p6 = scmp.lt.s32.totalorder %s846_s23, %s840_s21 }
  0x6a   : > { %711 = vmatprep.subr.msk.mxu0 %vm281_vm0, %v267_v12  ;;  %p849_p7 = por %p848_p6, %p847_p5 }
  0x6b   : > { %712 = vmatpush1.msk.msra.mxu0 %vm281_vm0, %v261_v11  ;;  %v447_v11 = vld [vmem:[%s1094_s5] sm:$0xf] }
  0x6c   : > { %713 = vmatmul.mubr.msk.f32.vlgmr.msra.gmra.mrb[0].mxu0 %vm268_vm1, %v262_v13  ;;  %p850_p8 = pnand %p849_p7, %p843_p4 }
  0x6d   : > { %356 = vmatprep.mubr.f32.mxu0 %v907_v0 }
  0x70   : > { %714 = vmatmul.mubr.msk.f32.gmra.mrb[2].mxu0 %vm268_vm1, %v263_v14 }
  0x71   : > { %362 = vmatprep.mubr.f32.mxu0 %v907_v0 }
  0x74   : > { %715 = vmatmul.mubr.msk.f32.gmra.mrb[4].mxu0 %vm268_vm1, %v264_v15 }
  0x75   : > { %368 = vmatprep.mubr.f32.mxu0 %v907_v0 }
  0x78   : > { %716 = vmatmul.mubr.msk.f32.gmra.mrb[6].mxu0 %vm268_vm1, %v265_v16 }
  0xa8   : > { %v382_v18 = vpop.permute.xlu0 %381  ;;  %v392_v19 = vpop.permute.xlu1 %391 }
  0xac   : > { %v387_v20 = vpop.permute.xlu0 %386  ;;  %v397_v21 = vpop.permute.xlu1 %396 }
  0xb1   : > { %v417_v22 = vpop.permute.xlu0 %416  ;;  %v421_v24 = vpop.permute.xlu1 %420 }
  0xb5   : > { %v425_v36 = vpop.permute.xlu1 %424  ;;  %v429_v43 = vpop.permute.xlu0 %428 }
  0xba   : > { %v598_v14 = vpop.permute.xlu1 %597 }
 0x13f   : > { %v352_v23 = vpop.f32.mrb[0].mxu0 }
 0x140   : > { %v399_v25 = vadd.f32 %v382_v18, %v352_v23  ;;  %v431_v26 = vadd.f32 %v417_v22, %v352_v23  ;;  %v354_v27 = vpop.f32.mrb[1].mxu0 }
 0x141   : > { %v400_v28 = vadd.f32 %v382_v18, %v354_v27  ;;  %v432_v29 = vadd.f32 %v417_v22, %v354_v27 }
 0x142   : > { %796 = vtanh.f32 %v399_v25 }
 0x143   : > { %798 = vtanh.f32 %v431_v26  ;;  %v358_v30 = vpop.f32.mrb[2].mxu0 }
 0x144   : > { %800 = vtanh.f32 %v400_v28  ;;  %v401_v31 = vadd.f32 %v387_v20, %v358_v30  ;;  %v433_v32 = vadd.f32 %v421_v24, %v358_v30  ;;  %v360_v33 = vpop.f32.mrb[3].mxu0 }
 0x145   : > { %802 = vtanh.f32 %v432_v29  ;;  %v402_v34 = vadd.f32 %v387_v20, %v360_v33  ;;  %v434_v35 = vadd.f32 %v421_v24, %v360_v33  ;;  %v606_v20 = vstv %s253_s27 }
 0x146   : > { %804 = vtanh.f32 %v401_v31 }
 0x147   : > { %806 = vtanh.f32 %v433_v32  ;;  %v364_v37 = vpop.f32.mrb[4].mxu0 }
 0x148   : > { %808 = vtanh.f32 %v402_v34  ;;  %v403_v38 = vadd.f32 %v392_v19, %v364_v37  ;;  %v435_v39 = vadd.f32 %v425_v36, %v364_v37  ;;  %v366_v40 = vpop.f32.mrb[5].mxu0 }
 0x149   : > { %810 = vtanh.f32 %v434_v35  ;;  %v404_v41 = vadd.f32 %v392_v19, %v366_v40  ;;  %v436_v42 = vadd.f32 %v425_v36, %v366_v40 }
 0x14a   : > { %812 = vtanh.f32 %v403_v38 }
 0x14b   : > { %814 = vtanh.f32 %v435_v39  ;;  %v370_v44 = vpop.f32.mrb[6].mxu0 }
 0x14c   : > { %v797_v45 = vpop.eup %796  ;;  %816 = vtanh.f32 %v404_v41  ;;  %v405_v46 = vadd.f32 %v397_v21, %v370_v44  ;;  %v437_v47 = vadd.f32 %v429_v43, %v370_v44  ;;  %v372_v48 = vpop.f32.mrb[7].mxu0 }
 0x14d   : > { %v799_v49 = vpop.eup %798  ;;  %818 = vtanh.f32 %v436_v42  ;;  %v406_v50 = vadd.f32 %v397_v21, %v372_v48  ;;  %v438_v51 = vadd.f32 %v429_v43, %v372_v48 }
 0x14e   : > { %v801_v52 = vpop.eup %800  ;;  %820 = vtanh.f32 %v405_v46 }
 0x14f   : > { %v803_v53 = vpop.eup %802  ;;  %822 = vtanh.f32 %v437_v47 }
 0x150   : > { %v805_v54 = vpop.eup %804  ;;  %824 = vtanh.f32 %v406_v50 }
 0x151   : > { %v807_v55 = vpop.eup %806  ;;  %826 = vtanh.f32 %v438_v51  ;;  %v729_v56 = vpack.c.bf16 %v805_v54, %v797_v45 }
 0x152   : > { %v809_v57 = vpop.eup %808  ;;  %v737_v58 = vpack.c.bf16 %v807_v55, %v799_v49 }
 0x153   : > { %v811_v59 = vpop.eup %810  ;;  %v727_v60 = vpack.c.bf16 %v809_v57, %v801_v52 }
 0x154   : > { %v813_v61 = vpop.eup %812  ;;  %v735_v62 = vpack.c.bf16 %v811_v59, %v803_v53 }
 0x155   : > { %v815_v63 = vpop.eup %814  ;;  %728 = vmatprep.subr.bf16.mxu1 %v727_v60 }
 0x156   : > { %v817_v1 = vpop.eup %816  ;;  %730 = vmatpush1.bf16.msra.mxu1 %v729_v56 }
 0x157   : > { %v819_v2 = vpop.eup %818 }
 0x158   : > { %v821_v3 = vpop.eup %820 }
 0x159   : > { %v823_v4 = vpop.eup %822  ;;  %v733_v5 = vpack.c.bf16 %v821_v3, %v813_v61 }
 0x15a   : > { %v825_v6 = vpop.eup %824  ;;  %v741_v7 = vpack.c.bf16 %v823_v4, %v815_v63 }
 0x15b   : > { %v827_v8 = vpop.eup %826  ;;  %v731_v9 = vpack.c.bf16 %v825_v6, %v817_v1 }
 0x15c   : > { %v739_v10 = vpack.c.bf16 %v827_v8, %v819_v2 }
 0x15d   : > { %732 = vmatprep.subr.bf16.mxu1 %v731_v9 }
 0x15e   : > { %734 = vmatpush1.bf16.msra.mxu1 %v733_v5 }
 0x15f   : > { %736 = vmatprep.subr.bf16.mxu1 %v735_v62 }
 0x161   : > { %717 = vmatmul.mubr.msk.f32.vlgmr.msra.gmra.mrb[0].mxu1 %vm448_vm2, %v447_v11 }
 0x162   : > { %738 = vmatpush1.bf16.msra.mxu1 %v737_v58  ;;  %587 = vmatprep.mubr.f32.mxu1 %v907_v0 }
 0x163   : > { %740 = vmatprep.subr.bf16.mxu1 %v739_v10 }
 0x166   : > { %742 = vmatpush1.bf16.msra.mxu1 %v741_v7 }
 0x169   : > { %718 = vmatmul.mubr.msk.f32.vlgmr.msra.gmra.mrb[2].mxu1 %vm448_vm2, %v447_v11 }
 0x234   : > { %v518_v12 = vpop.f32.mrb[0].mxu1 }
 0x235   : > { %v520_v13 = vpop.f32.mrb[1].mxu1  ;;  %v600_v16 = vadd.f32 %v598_v14, %v518_v12 }
 0x236   : > { %v601_v19 = vadd.f32 %v598_v14, %v520_v13 }
 0x23c   : > { %v589_v15 = vpop.f32.mrb[2].mxu1 }
 0x23d   : > { %v602_v17 = vadd.f32 %v598_v14, %v589_v15  ;;  %v591_v18 = vpop.f32.mrb[3].mxu1 }
 0x23e   : > { %v603_v21 = vadd.f32 %v598_v14, %v591_v18 }
 0x23f   : > { %v604_v22 = vsub.f32 %v602_v17, %v600_v16 }
 0x240   : > { %v605_v0 = vsub.f32 %v603_v21, %v601_v19 }
 0x241   : > { %v607_v23 = vmul.f32 %v606_v20, %v604_v22 }
 0x242   : > { %v608_v24 = vmul.f32 %v606_v20, %v605_v0 }
 0x243   : > { %v609_v25 = vadd.f32 %v607_v23, %v600_v16 }
 0x244   : > { %v610_v26 = vadd.f32 %v608_v24, %v601_v19 }
 0x246   : > { %v613_v27 = vcombine.low %v609_v25, %v610_v26 }
 0x248   : > { %615 = vst [vmem:[%s241_s11] sm:$0xff] %v613_v27 }
 0x249   : > { %853 = shalt.err (!%p850_p8)
}
 0x24a   : > { %s854_s24 = scalar_lea.hbm %s1047_s19, 128  ;;  %s858_s27 = scalar_lea.hbm %s1096_s7, 256 }
 0x24b   : > { %p855_p9 = scmp.ne.s32.totalorder %s1047_s19, %s854_s24  ;;  %p859_p0 = scmp.lt.u32.totalorder %s1047_s19, %s1096_s7 }
 0x24c   : > { %p860_p1 = scmp.lt.u32.totalorder %s858_s27, %s854_s24  ;;  %p862_p3 = scmp.lt.u32.totalorder %s854_s24, %s1047_s19 }
 0x24d   : > { %p856_p12 = pnand %p855_p9, %p995_p10 }
 0x24e   : > { %p861_p2 = por %p860_p1, %p859_p0 }
 0x24f   : > { %p857_p13 = pneg %p856_p12 }
 0x250   : > { %p863_p4 = por %p862_p3, %p861_p2 }
 0x252   : > { %p864_p5 = pnand %p863_p4, %p857_p13 }
 0x254   : > { %867 = shalt.err (!%p864_p5)
}
 0x255   : > { %745 = dma.vmem_to_hbm [thread:$0]  (%p995_p10), %s1049_s13, 128, %s1047_s19, %s617_s20  }
 0x256 PF: > { %p751_p6 = scmp.ge.s32.totalorder %s904_s9, 2  ;;  %s643_s30 = sand.u32 1, %s892_s0  }
 0x257   : > { %s644_s11 = scalar_lea.sflag [#allocation6], %s643_s30 }
 0x258   : > { %p748_p7 = pnand %p751_p6, %p999_p11 }
 0x25a   : > { %887 = dma.done.wait (!%p748_p7), %s644_s11, 128  }
 0x25b   : > { %889 = vsyncadd (!%p748_p7), %s644_s11, 4294967168  ;;  %p24_p8 = scmp.ge.s32.totalorder %s982_s12, 4   ;;  %s1099_s0 = smov %s896_s8 }
 0x25c   : > { %s1100_s8 = smov %s900_s1  ;;  %s1101_s1 = smov %s993_s15 }
 0x25d   : > { %s1102_s9 = smov %s982_s12  ;;  %26 = sbr.rel (!%p24_p8) target bundleno = 18 (0x12), region = 78 }
 0x264   :  { %649 = vsyncpa [#allocation6], 1 }
 0x265   :  { %651 = vsyncpa [#allocation6 + $0x1], 1 }

</bundles_post_ra>
